<compile_context>
chip_gen: v5e
topology: v5e:2x2
jax: 0.10.0
libtpu: 0.0.40
codegen_flags: <defaults>
</compile_context>

<pallas_src>
import jax
import jax.numpy as jnp
from jax.experimental import pallas as pl
from jax.experimental.pallas import tpu as pltpu

BN_EPS = 1e-5
_MIB = 1024 * 1024


def _round_up(n, m):
    return ((n + m - 1) // m) * m


def _siam_kernel(nk_ref, x_ref, w1t_ref, bnp_ref, wh_ref, bh_ref, out_ref, acc_ref):
    """Grid = (branch, k_tile): branch is parallel, k_tile is the reduction.

    nk_ref (SMEM, scalar prefetch) holds the number of real K tiles per
    branch so the shorter modality skips its zero tail entirely.
    """
    br = pl.program_id(0)
    k = pl.program_id(1)
    n_br = nk_ref[br]

    # ---- init accumulator at the start of each branch's K loop -------------
    @pl.when(k == 0)
    def _():
        acc_ref[...] = jnp.zeros_like(acc_ref)

    # ---- first-layer matmul partial: bf16 operands, f32 accumulate ---------
    # Skipped for k >= n_br (short branch); the clamped index maps also skip
    # the corresponding DMAs (block index unchanged -> no re-fetch).
    @pl.when(k < n_br)
    def _():
        acc_ref[...] += jnp.dot(x_ref[0], w1t_ref[0],
                                preferred_element_type=jnp.float32)

    # ---- epilogue on the branch's last real K tile --------------------------
    # bias + sigmoid + BatchNorm in f32, then fused bf16 classifier/domain
    # heads (lane-padded to a multiple of 128 -> unmasked, lane-dense stores).
    @pl.when(k == n_br - 1)
    def _():
        b1 = bnp_ref[0, 0:1, :]
        gamma = bnp_ref[0, 1:2, :]
        beta = bnp_ref[0, 2:3, :]

        h = jax.nn.sigmoid(acc_ref[...] + b1)                   # [B, dim1] f32

        # BatchNorm1d, training mode: biased batch statistics over batch axis.
        mean = jnp.mean(h, axis=0, keepdims=True)
        var = jnp.mean((h - mean) ** 2, axis=0, keepdims=True)
        bn = (h - mean) * jax.lax.rsqrt(var + BN_EPS) * gamma + beta

        out_ref[0] = (jnp.dot(bn.astype(jnp.bfloat16), wh_ref[...],
                              preferred_element_type=jnp.float32)
                      + bh_ref[...]).astype(out_ref.dtype)


def prepare_params(params, num_genes, num_prts, tk=None):
    """One-time, per-model preparation of kernel-ready weights.

    Hoists every weight transpose / pad / concat / bf16 cast out of the
    per-call forward path (the kernel is HBM-bandwidth-bound on W1).
    """
    dim1 = params["w_mod1"].shape[0]
    label_num = params["w_cls"].shape[0]
    dim2 = params["w_dom"].shape[0]
    max_feat = max(num_genes, num_prts)

    # ---- K (feature) tiling: big tiles, capped so v7x tiles stay small -----
    if tk is None:
        tk = min(_round_up(max_feat, 128), 2048)
    assert tk % 128 == 0
    nkx = -(-num_genes // tk)
    nky = -(-num_prts // tk)
    nk_max = max(nkx, nky)
    kp = nk_max * tk

    # ---- stacked, zero-padded, transposed first-layer weights (bf16) -------
    def prep_w1(w):                       # [dim1, in] -> [Kp, dim1]
        wt = w.T
        return jnp.pad(wt, ((0, kp - wt.shape[0]), (0, 0)))

    w1t = jnp.stack([prep_w1(params["w_mod1"]),
                     prep_w1(params["w_mod2"])]).astype(jnp.bfloat16)

    # ---- merged BN/bias params: [branch, (b1, gamma, beta), dim1] ----------
    bnp = jnp.stack([
        jnp.stack([params["b_mod1"], params["gamma1"], params["beta1"]]),
        jnp.stack([params["b_mod2"], params["gamma2"], params["beta2"]]),
    ]).astype(jnp.float32)

    # ---- fused classifier+domain head, lane-padded, bf16 weights -----------
    n_out = _round_up(label_num + dim2, 128)
    wh = jnp.concatenate([params["w_cls"].T, params["w_dom"].T], axis=1)  # [dim1, L+D]
    wh = jnp.pad(wh, ((0, 0), (0, n_out - wh.shape[1]))).astype(jnp.bfloat16)
    bh = jnp.concatenate([params["b_cls"], params["b_dom"]])
    bh = jnp.pad(bh, (0, n_out - bh.shape[0])).reshape(1, n_out).astype(jnp.float32)

    return {
        "w1t": w1t, "bnp": bnp, "wh": wh, "bh": bh,
        "nk": jnp.array([nkx, nky], jnp.int32),
        "tk": tk, "kp": kp, "nk_max": nk_max, "n_out": n_out,
        "dim1": dim1, "label_num": label_num, "dim2": dim2,
    }


def _vmem_limit_bytes(batch, tk, dim1, n_out):
    """Generation-aware scoped-VMEM limit for the chosen tiles."""
    est = (2 * batch * tk * 2          # x tile, double-buffered, bf16
           + 2 * tk * dim1 * 2         # w1^T tile, double-buffered, bf16
           + 2 * 3 * dim1 * 4          # BN params
           + 2 * dim1 * n_out * 2      # fused head weights (bf16)
           + 2 * n_out * 4             # fused head bias
           + 2 * batch * n_out * 4     # output block
           + batch * dim1 * 4)         # f32 accumulator scratch
    kind = jax.devices()[0].device_kind.lower()
    # v5e / v6e: 128 MiB physical VMEM -> allow up to 96 MiB scoped.
    # v7x (64 MiB physical) and unknown chips: stay at the 32 MiB scoped budget.
    cap = 96 * _MIB if ("v5" in kind or "v6" in kind) else 32 * _MIB
    return int(min(max(32 * _MIB, 2 * est), cap))


def siam_att_forward(x, y, prepped):
    """Returns (domain_x, domain_y, class_x, class_y), matching the PyTorch module."""
    batch = x.shape[0]
    tk = prepped["tk"]
    kp = prepped["kp"]
    nk_max = prepped["nk_max"]
    n_out = prepped["n_out"]
    dim1 = prepped["dim1"]
    label_num = prepped["label_num"]
    dim2 = prepped["dim2"]

    # Per-call work is activation prep only (weights were prepared once).
    def pad_cols(a):
        return jnp.pad(a, ((0, 0), (0, kp - a.shape[1])))

    x_stk = jnp.stack([pad_cols(x), pad_cols(y)]).astype(jnp.bfloat16)

    out = pl.pallas_call(
        _siam_kernel,
        out_shape=jax.ShapeDtypeStruct((2, batch, n_out), jnp.float32),
        grid_spec=pltpu.PrefetchScalarGridSpec(
            num_scalar_prefetch=1,                       # per-branch K-tile counts
            grid=(2, nk_max),
            in_specs=[
                # Clamp k so the short branch neither re-DMAs nor recomputes
                # its zero tail (block index unchanged -> DMA skipped).
                pl.BlockSpec((1, batch, tk),
                             lambda br, k, nk: (br, 0, jnp.minimum(k, nk[br] - 1))),
                pl.BlockSpec((1, tk, dim1),
                             lambda br, k, nk: (br, jnp.minimum(k, nk[br] - 1), 0)),
                pl.BlockSpec((1, 3, dim1), lambda br, k, nk: (br, 0, 0)),  # b1/gamma/beta
                pl.BlockSpec((dim1, n_out), lambda br, k, nk: (0, 0)),     # fused head W (bf16)
                pl.BlockSpec((1, n_out), lambda br, k, nk: (0, 0)),        # fused head b
            ],
            out_specs=pl.BlockSpec((1, batch, n_out), lambda br, k, nk: (br, 0, 0)),
            scratch_shapes=[pltpu.VMEM((batch, dim1), jnp.float32)],
        ),
        compiler_params=pltpu.CompilerParams(
            dimension_semantics=("parallel", "arbitrary"),
            vmem_limit_bytes=_vmem_limit_bytes(batch, tk, dim1, n_out),
        ),
    )(prepped["nk"], x_stk, prepped["w1t"], prepped["bnp"], prepped["wh"], prepped["bh"])

    class_x = out[0, :, :label_num]
    class_y = out[1, :, :label_num]
    domain_x = out[0, :, label_num:label_num + dim2]
    domain_y = out[1, :, label_num:label_num + dim2]
    return domain_x, domain_y, class_x, class_y


def _reference_forward(x, y, params):
    """Pure-JAX f32 reference (mirrors PyTorch semantics) for verification."""
    def branch(inp, w1, b1, gamma, beta):
        h = jax.nn.sigmoid(inp @ w1.T + b1)
        mean = h.mean(axis=0, keepdims=True)
        var = ((h - mean) ** 2).mean(axis=0, keepdims=True)
        return (h - mean) / jnp.sqrt(var + BN_EPS) * gamma + beta

    bx = branch(x, params["w_mod1"], params["b_mod1"], params["gamma1"], params["beta1"])
    by = branch(y, params["w_mod2"], params["b_mod2"], params["gamma2"], params["beta2"])
    class_x = bx @ params["w_cls"].T + params["b_cls"]
    class_y = by @ params["w_cls"].T + params["b_cls"]
    domain_x = bx @ params["w_dom"].T + params["b_dom"]
    domain_y = by @ params["w_dom"].T + params["b_dom"]
    return domain_x, domain_y, class_x, class_y


def init_params(key, num_prts, num_genes, label_num, dim1, dim2):
    ks = jax.random.split(key, 4)

    def lin(k, out_f, in_f):
        bound = 1.0 / jnp.sqrt(in_f)
        kw, kb = jax.random.split(k)
        w = jax.random.uniform(kw, (out_f, in_f), jnp.float32, -bound, bound)
        b = jax.random.uniform(kb, (out_f,), jnp.float32, -bound, bound)
        return w, b

    w_mod1, b_mod1 = lin(ks[0], dim1, num_genes)
    w_mod2, b_mod2 = lin(ks[1], dim1, num_prts)
    w_dom, b_dom = lin(ks[2], dim2, dim1)
    w_cls, b_cls = lin(ks[3], label_num, dim1)
    return {
        "w_mod1": w_mod1, "b_mod1": b_mod1,
        "gamma1": jnp.ones((dim1,), jnp.float32), "beta1": jnp.zeros((dim1,), jnp.float32),
        "w_mod2": w_mod2, "b_mod2": b_mod2,
        "gamma2": jnp.ones((dim1,), jnp.float32), "beta2": jnp.zeros((dim1,), jnp.float32),
        "w_dom": w_dom, "b_dom": b_dom,
        "w_cls": w_cls, "b_cls": b_cls,
    }


if __name__ == "__main__":
    # Small shapes; asymmetric feature dims + small tk exercise the per-branch
    # K-tile clamping path (num_genes -> 2 tiles, num_prts -> 1 tile).
    B = 8            # batch (>1 so BatchNorm batch statistics are meaningful)
    num_genes = 200  # features of modality x
    num_prts = 72    # features of modality y
    dim1 = 128       # hidden dim (stand-in for 768)
    dim2 = 32        # domain dim
    label_num = 8    # number of classes

    key = jax.random.PRNGKey(0)
    kx, ky, kparam = jax.random.split(key, 3)
    x = jax.random.normal(kx, (B, num_genes), jnp.float32)
    y = jax.random.normal(ky, (B, num_prts), jnp.float32)
    params = init_params(kparam, num_prts, num_genes, label_num, dim1, dim2)

    # One-time weight prep (hoisted out of the forward path); tk=128 forces
    # multi-tile, asymmetric K reduction at these small test shapes.
    prepped = prepare_params(params, num_genes, num_prts, tk=128)

    outs = siam_att_forward(x, y, prepped)
    outs = jax.block_until_ready(outs)

    refs = _reference_forward(x, y, params)
    for o, r in zip(outs, refs):
        assert o.shape == r.shape, (o.shape, r.shape)
        # bf16 first-layer + bf16 head matmuls (amplified through BatchNorm)
        # -> relaxed tolerance against the f32 reference.
        err = float(jnp.max(jnp.abs(o - r)))
        assert err < 6e-2, err

    print("KERNEL_OK")
</pallas_src>

<mosaic_0001>
module attributes {stable_mosaic.version = 11 : i64} {
  func.func @_siam_kernel(%arg0: i32, %arg1: i32, %arg2: memref<2xi32, #tpu.memory_space<smem>>, %arg3: memref<1x8x128xbf16, #tpu.memory_space<vmem>>, %arg4: memref<1x128x128xbf16, #tpu.memory_space<vmem>>, %arg5: memref<1x3x128xf32, #tpu.memory_space<vmem>>, %arg6: memref<128x128xbf16, #tpu.memory_space<vmem>>, %arg7: memref<1x128xf32, #tpu.memory_space<vmem>>, %arg8: memref<1x8x128xf32, #tpu.memory_space<vmem>>, %arg9: memref<8x128xf32, #tpu.memory_space<vmem>>) attributes {dimension_semantics = [#tpu.dimension_semantics<parallel>, #tpu.dimension_semantics<arbitrary>], iteration_bounds = array<i64: 2, 2>, scalar_prefetch = 1 : i64, scratch_operands = 1 : i64, tpu.core_type = #tpu.core_type<tc>, window_params = [{transform_indices = @transform_0, window_bounds = array<i64: 1, 8, 128>}, {transform_indices = @transform_1, window_bounds = array<i64: 1, 128, 128>}, {transform_indices = @transform_2, window_bounds = array<i64: 1, 3, 128>}, {pipeline_mode = #tpu.pipeline_mode<synchronous>, transform_indices = @transform_3, window_bounds = array<i64: 128, 128>}, {pipeline_mode = #tpu.pipeline_mode<synchronous>, transform_indices = @transform_4, window_bounds = array<i64: 1, 128>}, {transform_indices = @transform_5, window_bounds = array<i64: 1, 8, 128>}]} {
    %0 = arith.index_cast %arg0 : i32 to index
    %1 = memref.load %arg2[%0] : memref<2xi32, #tpu.memory_space<smem>>
    %c0_i32 = arith.constant 0 : i32
    %2 = arith.cmpi eq, %arg1, %c0_i32 : i32
    %3 = arith.extui %2 : i1 to i32
    %c0_i32_0 = arith.constant 0 : i32
    %4 = arith.cmpi ne, %3, %c0_i32_0 : i32
    scf.if %4 {
      %cst = arith.constant 0.000000e+00 : f32
      %12 = vector.broadcast %cst : f32 to vector<8x128xf32>
      %c0 = arith.constant 0 : index
      %c0_3 = arith.constant 0 : index
      %13 = vector.load %arg9[%c0, %c0_3] : memref<8x128xf32, #tpu.memory_space<vmem>>, vector<8x128xf32>
      tpu.vector_store %arg9[%c0, %c0_3], %12 {strides = array<i32>} : memref<8x128xf32, #tpu.memory_space<vmem>>, vector<8x128xf32>,
    } else {
    }
    %5 = arith.cmpi slt, %arg1, %1 : i32
    %6 = arith.extui %5 : i1 to i32
    %c0_i32_1 = arith.constant 0 : i32
    %7 = arith.cmpi ne, %6, %c0_i32_1 : i32
    scf.if %7 {
      %c0 = arith.constant 0 : index
      %c0_3 = arith.constant 0 : index
      %12 = vector.load %arg9[%c0, %c0_3] : memref<8x128xf32, #tpu.memory_space<vmem>>, vector<8x128xf32>
      %c0_4 = arith.constant 0 : index
      %c0_5 = arith.constant 0 : index
      %c0_6 = arith.constant 0 : index
      %13 = vector.load %arg3[%c0_4, %c0_5, %c0_6] : memref<1x8x128xbf16, #tpu.memory_space<vmem>>, vector<1x8x128xbf16>
      %14 = vector.shape_cast %13 : vector<1x8x128xbf16> to vector<8x128xbf16>
      %c0_7 = arith.constant 0 : index
      %c0_8 = arith.constant 0 : index
      %c0_9 = arith.constant 0 : index
      %15 = vector.load %arg4[%c0_7, %c0_8, %c0_9] : memref<1x128x128xbf16, #tpu.memory_space<vmem>>, vector<1x128x128xbf16>
      %16 = vector.shape_cast %15 : vector<1x128x128xbf16> to vector<128x128xbf16>
      %cst = arith.constant dense<0.000000e+00> : vector<8x128xf32>
      %17 = tpu.matmul %14, %16, %cst {dimension_numbers = #tpu.dot_dimension_numbers<[1], [0], [0], [1], [0, 0, 1, 1], [], []>} : vector<8x128xbf16>, vector<128x128xbf16>, vector<8x128xf32> -> vector<8x128xf32>
      %18 = arith.addf %12, %17 : vector<8x128xf32>
      %c0_10 = arith.constant 0 : index
      %c0_11 = arith.constant 0 : index
      %19 = vector.load %arg9[%c0_10, %c0_11] : memref<8x128xf32, #tpu.memory_space<vmem>>, vector<8x128xf32>
      tpu.vector_store %arg9[%c0_10, %c0_11], %18 {strides = array<i32>} : memref<8x128xf32, #tpu.memory_space<vmem>>, vector<8x128xf32>,
    } else {
    }
    %c1_i32 = arith.constant 1 : i32
    %8 = arith.subi %1, %c1_i32 : i32
    %9 = arith.cmpi eq, %arg1, %8 : i32
    %10 = arith.extui %9 : i1 to i32
    %c0_i32_2 = arith.constant 0 : i32
    %11 = arith.cmpi ne, %10, %c0_i32_2 : i32
    scf.if %11 {
      %c0 = arith.constant 0 : index
      %c0_3 = arith.constant 0 : index
      %c0_4 = arith.constant 0 : index
      %12 = vector.load %arg5[%c0, %c0_3, %c0_4] : memref<1x3x128xf32, #tpu.memory_space<vmem>>, vector<1x1x128xf32>
      %13 = vector.shape_cast %12 : vector<1x1x128xf32> to vector<1x128xf32>
      %c0_5 = arith.constant 0 : index
      %c1 = arith.constant 1 : index
      %c0_6 = arith.constant 0 : index
      %14 = vector.load %arg5[%c0_5, %c1, %c0_6] : memref<1x3x128xf32, #tpu.memory_space<vmem>>, vector<1x1x128xf32>
      %15 = vector.shape_cast %14 : vector<1x1x128xf32> to vector<1x128xf32>
      %c0_7 = arith.constant 0 : index
      %c2 = arith.constant 2 : index
      %c0_8 = arith.constant 0 : index
      %16 = vector.load %arg5[%c0_7, %c2, %c0_8] : memref<1x3x128xf32, #tpu.memory_space<vmem>>, vector<1x1x128xf32>
      %17 = vector.shape_cast %16 : vector<1x1x128xf32> to vector<1x128xf32>
      %c0_9 = arith.constant 0 : index
      %c0_10 = arith.constant 0 : index
      %18 = vector.load %arg9[%c0_9, %c0_10] : memref<8x128xf32, #tpu.memory_space<vmem>>, vector<8x128xf32>
      %19 = vector.broadcast %13 : vector<1x128xf32> to vector<8x128xf32>
      %20 = arith.addf %18, %19 : vector<8x128xf32>
      %21 = arith.negf %20 : vector<8x128xf32>
      %22 = math.exp %21 : vector<8x128xf32>
      %cst = arith.constant 1.000000e+00 : f32
      %23 = vector.broadcast %cst : f32 to vector<8x128xf32>
      %24 = arith.addf %23, %22 : vector<8x128xf32>
      %25 = arith.divf %23, %24 : vector<8x128xf32>
      %cst_11 = arith.constant dense<0.000000e+00> : vector<128xf32>
      %26 = vector.multi_reduction <add>, %25, %cst_11 [0] : vector<8x128xf32> to vector<128xf32>
      %27 = vector.shape_cast %26 : vector<128xf32> to vector<1x128xf32>
      %cst_12 = arith.constant 8.000000e+00 : f32
      %28 = vector.broadcast %cst_12 : f32 to vector<1x128xf32>
      %29 = arith.divf %27, %28 : vector<1x128xf32>
      %30 = vector.broadcast %29 : vector<1x128xf32> to vector<8x128xf32>
      %31 = arith.subf %25, %30 : vector<8x128xf32>
      %32 = arith.mulf %31, %31 : vector<8x128xf32>
      %cst_13 = arith.constant dense<0.000000e+00> : vector<128xf32>
      %33 = vector.multi_reduction <add>, %32, %cst_13 [0] : vector<8x128xf32> to vector<128xf32>
      %34 = vector.shape_cast %33 : vector<128xf32> to vector<1x128xf32>
      %cst_14 = arith.constant 8.000000e+00 : f32
      %35 = vector.broadcast %cst_14 : f32 to vector<1x128xf32>
      %36 = arith.divf %34, %35 : vector<1x128xf32>
      %37 = vector.broadcast %29 : vector<1x128xf32> to vector<8x128xf32>
      %38 = arith.subf %25, %37 : vector<8x128xf32>
      %cst_15 = arith.constant 9.99999974E-6 : f32
      %39 = vector.broadcast %cst_15 : f32 to vector<1x128xf32>
      %40 = arith.addf %36, %39 : vector<1x128xf32>
      %41 = math.rsqrt %40 : vector<1x128xf32>
      %42 = vector.broadcast %41 : vector<1x128xf32> to vector<8x128xf32>
      %43 = arith.mulf %38, %42 : vector<8x128xf32>
      %44 = vector.broadcast %15 : vector<1x128xf32> to vector<8x128xf32>
      %45 = arith.mulf %43, %44 : vector<8x128xf32>
      %46 = vector.broadcast %17 : vector<1x128xf32> to vector<8x128xf32>
      %47 = arith.addf %45, %46 : vector<8x128xf32>
      %48 = arith.truncf %47 : vector<8x128xf32> to vector<8x128xbf16>
      %c0_16 = arith.constant 0 : index
      %c0_17 = arith.constant 0 : index
      %49 = vector.load %arg6[%c0_16, %c0_17] : memref<128x128xbf16, #tpu.memory_space<vmem>>, vector<128x128xbf16>
      %cst_18 = arith.constant dense<0.000000e+00> : vector<8x128xf32>
      %50 = tpu.matmul %48, %49, %cst_18 {dimension_numbers = #tpu.dot_dimension_numbers<[1], [0], [0], [1], [0, 0, 1, 1], [], []>} : vector<8x128xbf16>, vector<128x128xbf16>, vector<8x128xf32> -> vector<8x128xf32>
      %c0_19 = arith.constant 0 : index
      %c0_20 = arith.constant 0 : index
      %51 = vector.load %arg7[%c0_19, %c0_20] : memref<1x128xf32, #tpu.memory_space<vmem>>, vector<1x128xf32>
      %52 = vector.broadcast %51 : vector<1x128xf32> to vector<8x128xf32>
      %53 = arith.addf %50, %52 : vector<8x128xf32>
      %c0_21 = arith.constant 0 : index
      %c0_22 = arith.constant 0 : index
      %c0_23 = arith.constant 0 : index
      %54 = vector.load %arg8[%c0_21, %c0_22, %c0_23] : memref<1x8x128xf32, #tpu.memory_space<vmem>>, vector<1x8x128xf32>
      %55 = vector.shape_cast %54 : vector<1x8x128xf32> to vector<8x128xf32>
      %56 = vector.shape_cast %53 : vector<8x128xf32> to vector<1x8x128xf32>
      tpu.vector_store %arg8[%c0_21, %c0_22, %c0_23], %56 {strides = array<i32>} : memref<1x8x128xf32, #tpu.memory_space<vmem>>, vector<1x8x128xf32>,
    } else {
    }
    return
  }
  func.func @transform_0(%arg0: i32, %arg1: i32, %arg2: memref<2xi32, #tpu.memory_space<smem>>) -> (i32, i32, i32) {
    %0 = arith.index_cast %arg0 : i32 to index
    %1 = memref.load %arg2[%0] : memref<2xi32, #tpu.memory_space<smem>>
    %c1_i32 = arith.constant 1 : i32
    %2 = arith.subi %1, %c1_i32 : i32
    %3 = arith.minsi %arg1, %2 : i32
    %c0_i32 = arith.constant 0 : i32
    %c0_i32_0 = arith.constant 0 : i32
    return %arg0, %c0_i32, %3 : i32, i32, i32
  }
  func.func @transform_1(%arg0: i32, %arg1: i32, %arg2: memref<2xi32, #tpu.memory_space<smem>>) -> (i32, i32, i32) {
    %0 = arith.index_cast %arg0 : i32 to index
    %1 = memref.load %arg2[%0] : memref<2xi32, #tpu.memory_space<smem>>
    %c1_i32 = arith.constant 1 : i32
    %2 = arith.subi %1, %c1_i32 : i32
    %3 = arith.minsi %arg1, %2 : i32
    %c0_i32 = arith.constant 0 : i32
    %c0_i32_0 = arith.constant 0 : i32
    return %arg0, %3, %c0_i32 : i32, i32, i32
  }
  func.func @transform_2(%arg0: i32, %arg1: i32, %arg2: memref<2xi32, #tpu.memory_space<smem>>) -> (i32, i32, i32) {
    %c0_i32 = arith.constant 0 : i32
    %c0_i32_0 = arith.constant 0 : i32
    %c0_i32_1 = arith.constant 0 : i32
    return %arg0, %c0_i32, %c0_i32_0 : i32, i32, i32
  }
  func.func @transform_3(%arg0: i32, %arg1: i32, %arg2: memref<2xi32, #tpu.memory_space<smem>>) -> (i32, i32) {
    %c0_i32 = arith.constant 0 : i32
    %c0_i32_0 = arith.constant 0 : i32
    %c0_i32_1 = arith.constant 0 : i32
    return %c0_i32, %c0_i32_0 : i32, i32
  }
  func.func @transform_4(%arg0: i32, %arg1: i32, %arg2: memref<2xi32, #tpu.memory_space<smem>>) -> (i32, i32) {
    %c0_i32 = arith.constant 0 : i32
    %c0_i32_0 = arith.constant 0 : i32
    %c0_i32_1 = arith.constant 0 : i32
    return %c0_i32, %c0_i32_0 : i32, i32
  }
  func.func @transform_5(%arg0: i32, %arg1: i32, %arg2: memref<2xi32, #tpu.memory_space<smem>>) -> (i32, i32, i32) {
    %c0_i32 = arith.constant 0 : i32
    %c0_i32_0 = arith.constant 0 : i32
    %c0_i32_1 = arith.constant 0 : i32
    return %arg0, %c0_i32, %c0_i32_0 : i32, i32, i32
  }
}

</mosaic_0001>

<bundles_post_ra>
// kernel: tpu_custom_call.1
= control target key start
LH: loop header
LB: loop body
LE: loop exit
PB: predicated region body
PF: predicated region fallthrough
CT: control target
= control target key end

     0   :  { %s1308_s24 = smov [#allocation4]   ;;  %s1733_s0 = inlined_call_operand.vmem [shape: s32[2], index: 0, kind: input, shape index: {}]   ;;  %s1734_s1 = inlined_call_operand.hbm [shape: bf16[2,8,256], index: 1, kind: input, shape index: {}]   ;;  %s1735_s2 = inlined_call_operand.hbm [shape: bf16[2,256,128], index: 2, kind: input, shape index: {}]   ;;  %s1736_s3 = inlined_call_operand.vmem [shape: f32[2,3,128], index: 3, kind: input, shape index: {}]   ;;  %s1737_s4 = inlined_call_operand.hbm [shape: bf16[128,128], index: 4, kind: input, shape index: {}]   ;;  %s1738_s5 = inlined_call_operand.vmem [shape: f32[1,128], index: 5, kind: input, shape index: {}]   ;;  %s1739_s6 = inlined_call_operand.hbm [shape: f32[2,8,128], index: 6, kind: output, shape index: {}]  }
   0x1   :  { %1758 = sst [smem:[#allocation35_spill]] %s1736_s3  ;;  %s12_s23 = sshll.u32 %s1733_s0, 4  ;;  %s13_s23 = int_to_ptr.vmem [resolvable:$true] %s12_s23 }
   0x2   :  { %1759 = sst [smem:[#allocation36_spill]] %s1737_s4 }
   0x3   :  { %1760 = sst [smem:[#allocation37_spill]] %s1738_s5 }
   0x4   :  { %1761 = sst [smem:[#allocation38_spill]] %s1739_s6 }
   0x5   :  { %15 = dma.vmem_to_smem %s13_s23, 16, %s1308_s24, [#allocation3] }
   0x6   :  { %1234 = dma.done.wait [#allocation3], 16 }
   0x7   :  { %1235 = vsyncadd [#allocation3], 4294967280 }
   0x8   :  { %18 = sfence }
   0x9   :  { %19 = vsyncpa [#allocation6], 0 }
   0xa   :  { %21 = vsyncpa [#allocation6 + $0x1], 0 }
   0xb   :  { %22 = vsyncpa [#allocation9], 0 }
   0xc   :  { %24 = vsyncpa [#allocation9 + $0x1], 0 }
   0xd   :  { %25 = vsyncpa [#allocation7], 0 }
   0xe   :  { %27 = vsyncpa [#allocation7 + $0x1], 0  ;;  %s1352_s25 = smov 0   ;;  %s1354_s26 = smov 0  }
   0xf   :  { %s1356_s27 = smov 0   ;;  %s1358_s28 = smov 0  }
  0x10   :  { %s1360_s0 = smov 0   ;;  %s1362_s29 = smov 0  }
  0x11   :  { %s1364_s30 = smov 0   ;;  %s1366_s7 = smov 0  }
  0x12   :  { %s1368_s8 = smov 0   ;;  %s1370_s9 = smov 0  }
  0x13   :  { %s1372_s10 = smov 0   ;;  %s1374_s11 = smov 0  }
  0x14   :  { %s1376_s12 = smov 0   ;;  %s1378_s13 = smov 0  }
  0x15 LB: > { %1762 = sst [smem:[#allocation21_spill]] %s1254_s25  ;;  %s1423_s14 = sadd.s32 4294967295, %s1306_s13   ;;  %s1306_s13 = sphi %s1378_s13, %s33_s13   ;;  %s1302_s12 = sphi %s1376_s12, %s1826_s12   ;;  %s1298_s11 = sphi %s1374_s11, %s1825_s11   ;;  %s1294_s10 = sphi %s1372_s10, %s1824_s10   ;;  %s1290_s9 = sphi %s1370_s9, %s1823_s9   ;;  %s1286_s8 = sphi %s1368_s8, %s1822_s8   ;;  %s1282_s7 = sphi %s1366_s7, %s1821_s7   ;;  %s1278_s30 = sphi %s1364_s30, %s1820_s30   ;;  %s1274_s29 = sphi %s1362_s29, %s1819_s29   ;;  %s1270_s0 = sphi %s1360_s0, %s1818_s0   ;;  %s1266_s28 = sphi %s1358_s28, %s1817_s28   ;;  %s1262_s27 = sphi %s1356_s27, %s1810_s27   ;;  %s1258_s26 = sphi %s1354_s26, %s1809_s26   ;;  %s1254_s25 = sphi %s1352_s25, %s1808_s25  }
  0x16   : > { %1763 = sst [smem:[#allocation22_spill]] %s1258_s26  ;;  %s769_s15 = sadd.s32 4294967294, %s1306_s13  }
  0x17   : > { %1764 = sst [smem:[#allocation23_spill]] %s1262_s27  ;;  %p1757_p0 = scmp.eq.s32.totalorder %s1423_s14, 0 }
  0x18   : > { %1765 = sst [smem:[#allocation24_spill]] %s1270_s0  ;;  %p202_p1 = scmp.ne.s32.totalorder %s1262_s27, %s1258_s26 }
  0x19   : > { %1766 = sst [smem:[#allocation25_spill]] %s1290_s9  ;;  %p203_p2 = scmp.eq.s32.totalorder %s1423_s14, 3 }
  0x1a   : > { %1767 = sst [smem:[#allocation26_spill]] %s1294_s10  ;;  %p208_p3 = scmp.ne.s32.totalorder %s1258_s26, %s1254_s25 }
  0x1b   : > { %p209_p4 = scmp.eq.s32.totalorder %s769_s15, 3  ;;  %p774_p5 = scmp.ge.s32.totalorder %s1306_s13, 1 }
  0x1c   : > { %p1433_p6 = por %p203_p2, %p202_p1  ;;  %p216_p7 = scmp.lt.s32.totalorder %s1306_s13, 5 }
  0x1d   : > { %p1438_p8 = por %p209_p4, %p208_p3  ;;  %s1773_s4 = sld [smem:[#allocation36_spill]] }
  0x1e   : > { %s1768_s16 = scalar_select %p1433_p6, 1, 0 }
  0x1f   : > { %s1770_s17 = scalar_select %p1438_p8, 1, 0 }
  0x20   : > { %1769 = sst [smem:[#allocation27_spill]] %s1768_s16  ;;  %p1442_p9 = pnand %p774_p5, %p216_p7 }
  0x21   : > { %1771 = sst [smem:[#allocation28_spill]] %s1770_s17  ;;  %s1309_s22 = smov [#allocation10]  }
  0x22   : > { %p895_p10 = pneg %p1442_p9  ;;  %s229_s23 = sshll.u32 %s1309_s22, 4  ;;  %s230_s23 = int_to_ptr.vmem [resolvable:$true] %s229_s23 }
  0x23   : > { %s227_s21 = sshll.u32 %s1773_s4, 4  ;;  %s1740_s24 = smov 64   ;;  %s228_s21 = int_to_ptr.hbm [resolvable:$true] %s227_s21 }
  0x24   : > { %p896_p11 = pnand %p895_p10, %p1757_p0  ;;  %s1741_s15 = smov 4  }
  0x25   : > { %s42_s19 = sadd.s32 1, %s1298_s11  ;;  %s45_s20 = sadd.s32 1, %s1302_s12 }
  0x26   : > { %898 = dma.hbm_to_vmem [thread:$0]  (!%p896_p11), %s228_s21, 1024, %s230_s23, [#allocation9], %s1740_s24, %s1740_s24, %s1741_s15  }
  0x27   : > { %p43_p12 = scmp.ge.s32.totalorder %s42_s19, 2  ;;  %s49_s4 = sld [smem:[#allocation4 + %s1302_s12]] }
  0x28   : > { %p75_p13 = scmp.ne.s32.totalorder %s1282_s7, %s1278_s30  ;;  %s85_s22 = sld [smem:[#allocation4 + %s1302_s12]] }
  0x29   : > { %s1828_s19 = smov (%p43_p12, %s42_s19), 0  ;;  %s1830_s20 = smov (!%p43_p12, %s45_s20), %s1302_s12 }
  0x2a   : > { %1774 = sst [smem:[#allocation29_spill]] %s1828_s19  ;;  %p47_p1 = scmp.ge.s32.totalorder %s1830_s20, 2 }
  0x2b   : > { %p1470_p3 = por %p1757_p0, %p75_p13  ;;  %s62_s17 = sadd.s32 1, %s1286_s8 }
  0x2c   : > { %s1832_s20 = smov (%p47_p1, %s1830_s20), 0  ;;  %p69_p5 = scmp.ne.s32.totalorder %s1286_s8, %s1282_s7 }
  0x2d   : > { %s770_s21 = sadd.s32 4294967295, %s49_s4  ;;  %1775 = sst [smem:[#allocation30_spill]] %s1832_s20 }
  0x2e   : > { %p51_p2 = scmp.lt.s32.totalorder %s1298_s11, %s770_s21  ;;  %s53_s30 = sld [smem:[#allocation4 + %s1832_s20]] }
  0x2f   : > { %s772_s15 = sadd.s32 4294967295, %s85_s22  ;;  %s89_s4 = sld [smem:[#allocation4 + %s1832_s20]] }
  0x30   : > { %s52_s24 = scalar_select %p51_p2, %s1298_s11, %s770_s21 }
  0x31   : > { %p87_p4 = scmp.lt.s32.totalorder %s1298_s11, %s772_s15  ;;  %p111_p7 = scmp.ne.s32.totalorder %s1270_s0, %s1266_s28 }
  0x32   : > { %p70_p10 = scmp.eq.s32.totalorder %s1306_s13, 0  ;;  %s57_s22 = ssub.s32 %s1302_s12, %s1832_s20 }
  0x33   : > { %s88_s25 = scalar_select %p87_p4, %s1298_s11, %s772_s15 }
  0x34   : > { %s771_s6 = sadd.s32 4294967295, %s53_s30  ;;  %p1488_p12 = por %p111_p7, %p1757_p0 }
  0x35   : > { %p55_p11 = scmp.lt.s32.totalorder %s1828_s19, %s771_s6  ;;  %s773_s16 = sadd.s32 4294967295, %s89_s4 }
  0x36   : > { %s1777_s21 = scalar_select %p1488_p12, 1, 0 }
  0x37   : > { %s56_s5 = scalar_select %p55_p11, %s1828_s19, %s771_s6 }
  0x38   : > { %1778 = sst [smem:[#allocation31_spill]] %s1777_s21  ;;  %p1497_p13 = por %p70_p10, %p69_p5 }
  0x39   : > { %p91_p1 = scmp.lt.s32.totalorder %s1828_s19, %s773_s16  ;;  %s58_s15 = ssub.s32 %s52_s24, %s56_s5 }
  0x3a   : > { %s98_s30 = sadd.s32 1, %s1274_s29  ;;  %s59_s9 = sor.u32 %s58_s15, %s57_s22 }
  0x3b   : > { %p105_p2 = scmp.ne.s32.totalorder %s1274_s29, %s1270_s0  ;;  %p60_p4 = scmp.eq.s32.totalorder %s59_s9, 0 }
  0x3c   : > { %p190_p5 = scmp.eq.s32.totalorder %s57_s22, 0  ;;  %s192_s24 = sadd.s32 1, %s1262_s27 }
  0x3d   : > { %s92_s6 = scalar_select %p91_p1, %s1828_s19, %s773_s16 }
  0x3e   : > { %s1507_s4 = scalar_select %p60_p4, %s1286_s8, %s62_s17  }
  0x3f   : > { %s94_s5 = ssub.s32 %s88_s25, %s92_s6  ;;  %p915_p7 = scmp.lt.s32.totalorder %s1306_s13, 4 }
  0x40   : > { %1780 = sst [smem:[#allocation32_spill]] %s1507_s4  ;;  %s95_s20 = sor.u32 %s94_s5, %s57_s22 }
  0x41   : > { %p96_p11 = scmp.eq.s32.totalorder %s95_s20, 0  ;;  %s1750_s15 = sand.u32 1, %s1286_s8  }
  0x42   : > { %s1513_s9 = scalar_select %p190_p5, %s1262_s27, %s192_s24  }
  0x43   : > { %s1516_s3 = scalar_select %p96_p11, %s1274_s29, %s98_s30  }
  0x44   : > { %1781 = sst [smem:[#allocation33_spill]] %s1513_s9  ;;  %p1532_p1 = por %p105_p2, %p70_p10 }
  0x45   : > { %1782 = sst [smem:[#allocation34_spill]] %s1516_s3  ;;  %p1540_p4 = pnand %p915_p7, %p1497_p13 }
  0x46   : > { %s883_s10 = scalar_select %p1497_p13, [#allocation4], [#allocation12] }
  0x47   : > { %s884_s16 = scalar_select %p1497_p13, %s1302_s12, 0 }
  0x48   : > { %s1834_s10 = smov (!%p915_p7, %s883_s10), [#allocation14]  ;;  %s777_s20 = sshll.u32 %s1750_s15, 2 }
  0x49   : > { %s1836_s16 = smov (!%p915_p7, %s884_s16), 0  ;;  %p1550_p5 = pnand %p915_p7, %p1532_p1 }
  0x4a   : > { %s251_s22 = sld [smem:[%s1834_s10 + %s1836_s16]]  ;;  %s779_s24 = sshll.u32 %s1302_s12, 1 }
  0x4b   : > { %s886_s6 = scalar_select %p1532_p1, [#allocation4], [#allocation13] }
  0x4c   : > { %s887_s28 = scalar_select %p1532_p1, %s1302_s12, 0 }
  0x4d   : > { %s250_s19 = scalar_lea.vmem [#allocation5], %s777_s20  ;;  %s1838_s6 = smov (!%p915_p7, %s886_s6), [#allocation15] }
  0x4e   : > { %s264_s4 = sshll.u32 %s250_s19, 4  ;;  %s1840_s28 = smov (!%p915_p7, %s887_s28), 0  ;;  %s265_s4 = int_to_ptr.vmem [resolvable:$true] %s264_s4 }
  0x4f   : > { %s276_s3 = sld [smem:[%s1838_s6 + %s1840_s28]]  ;;  %s273_s26 = sand.u32 1, %s1274_s29  }
  0x50   : > { %s778_s5 = sadd.s32 4294967295, %s251_s22  ;;  %s1786_s21 = sand.u32 1, %s1286_s8  }
  0x51   : > { %p253_p10 = scmp.lt.s32.totalorder %s1298_s11, %s778_s5  ;;  %s247_s20 = scalar_lea.sflag [#allocation6], %s1786_s21 }
  0x52   : > { %p1094_p2 = pneg %p1540_p4  ;;  %s1097_s28 = scalar_lea.hbm %s1734_s1, 16 }
  0x53   : > { %s254_s10 = scalar_select %p253_p10, %s1298_s11, %s778_s5 }
  0x55   : > { %s258_s16 = sadd.s32 %s779_s24, %s254_s10 }
  0x56   : > { %s780_s15 = sshll.u32 %s258_s16, 2 }
  0x57   : > { %s260_s25 = scalar_lea.hbm %s1734_s1, %s780_s15 }
  0x58   : > { %s262_s22 = sshll.u32 %s260_s25, 4  ;;  %s263_s22 = int_to_ptr.hbm [resolvable:$true] %s262_s22 }
  0x59   : > { %s1090_s19 = sshra.s32 %s263_s22, 4  ;;  %s1091_s19 = int_to_ptr.hbm [resolvable:$true] %s1090_s19 }
  0x5a   : > { %s1092_s0 = scalar_lea.hbm %s1091_s19, 4  ;;  %p1098_p1 = scmp.lt.s32.totalorder %s1091_s19, %s1734_s1 }
  0x5b   : > { %p1093_p13 = scmp.ne.s32.totalorder %s1091_s19, %s1092_s0  ;;  %p1099_p10 = scmp.lt.s32.totalorder %s1097_s28, %s1092_s0 }
  0x5d   : > { %p1095_p7 = pnand %p1094_p2, %p1093_p13  ;;  %p1100_p0 = por %p1099_p10, %p1098_p1 }
  0x5f   : > { %p1096_p11 = pneg %p1095_p7 }
  0x61   : > { %p1101_p8 = pnand %p1100_p0, %p1096_p11 }
  0x63   : > { %1104 = shalt.err (!%p1101_p8)
}
  0x64   : > { %904 = dma.hbm_to_vmem [thread:$0]  (!%p1540_p4), %s263_s22, 64, %s265_s4, %s247_s20  }
  0x65   : > { %s781_s21 = sshll.u32 %s273_s26, 6  ;;  %s782_s9 = sadd.s32 4294967295, %s276_s3 }
  0x66   : > { %p278_p13 = scmp.lt.s32.totalorder %s1298_s11, %s782_s9  ;;  %s784_s24 = sshll.u32 %s1302_s12, 5 }
  0x67   : > { %s271_s16 = sand.u32 1, %s1306_s13   ;;  %s275_s19 = scalar_lea.vmem [#allocation8], %s781_s21 }
  0x68   : > { %s279_s10 = scalar_select %p278_p13, %s1298_s11, %s782_s9 }
  0x69   : > { %s289_s0 = sshll.u32 %s275_s19, 4  ;;  %s272_s4 = scalar_lea.sflag [#allocation9], %s271_s16  ;;  %s290_s0 = int_to_ptr.vmem [resolvable:$true] %s289_s0 }
  0x6a   : > { %s783_s25 = sshll.u32 %s279_s10, 4  ;;  %p1124_p8 = pneg %p1550_p5 }
  0x6b   : > { %s284_s5 = sadd.s32 %s784_s24, %s783_s25  ;;  %s1127_s21 = scalar_lea.hbm %s1735_s2, 256 }
  0x6c   : > { %s785_s6 = sshll.u32 %s284_s5, 2 }
  0x6d   : > { %s286_s17 = scalar_lea.hbm %s1735_s2, %s785_s6 }
  0x6e   : > { %s287_s15 = sshll.u32 %s286_s17, 4  ;;  %s288_s15 = int_to_ptr.hbm [resolvable:$true] %s287_s15 }
  0x6f   : > { %s1120_s26 = sshra.s32 %s288_s15, 4  ;;  %s1121_s26 = int_to_ptr.hbm [resolvable:$true] %s1120_s26 }
  0x70   : > { %s1122_s3 = scalar_lea.hbm %s1121_s26, 64  ;;  %p1128_p7 = scmp.lt.s32.totalorder %s1121_s26, %s1735_s2 }
  0x71   : > { %p1123_p0 = scmp.ne.s32.totalorder %s1121_s26, %s1122_s3  ;;  %p1129_p11 = scmp.lt.s32.totalorder %s1127_s21, %s1122_s3 }
  0x73   : > { %p1125_p4 = pnand %p1124_p8, %p1123_p0  ;;  %p1130_p1 = por %p1129_p11, %p1128_p7 }
  0x75   : > { %p1126_p2 = pneg %p1125_p4 }
  0x77   : > { %p1131_p10 = pnand %p1130_p1, %p1126_p2 }
  0x79   : > { %1134 = shalt.err (!%p1131_p10)
}
  0x7a   : > { %s1787_s10 = smov 4   ;;  %s1788_s16 = smov 64  }
  0x7b   : > { %909 = dma.hbm_to_vmem [thread:$0]  (!%p1550_p5), %s288_s15, 1024, %s290_s0, %s272_s4, %s1788_s16, %s1788_s16, %s1787_s10  }
  0x7c   : > { %308 = sbr.rel (%p1442_p9) target bundleno = 602 (0x25a), region = 40  ;;  %s310_s25 = sand.u32 (!%p1442_p9), 1, %s1282_s7  }
  0x7d   : > { %s1605_s19 = sshll.u32 (!%p1442_p9), %s310_s25, 2  ;;  %s311_s5 = scalar_lea.sflag (!%p1442_p9), [#allocation6], %s310_s25 }
  0x7e   : > { %s314_s6 = scalar_lea.vmem (!%p1442_p9), [#allocation5], %s1605_s19 }
  0x81   : > { %1237 = dma.done.wait (%p1470_p3), %s311_s5, 64  }
  0x82   : > { %1239 = vsyncadd (%p1470_p3), %s311_s5, 4294967232  ;;  %s1789_s30 = sld [smem:[#allocation24_spill]]  ;;  %s320_s0 = sand.u32 1, %s1423_s14  }
  0x83   : > { %s321_s17 = scalar_lea.sflag [#allocation9], %s320_s0 }
  0x88   : > { %s322_s27 = sand.u32 1, %s1789_s30  }
  0x89   : > { %s788_s18 = sshll.u32 %s322_s27, 6 }
  0x8a   : > { %s1614_s15 = scalar_lea.vmem [#allocation8], %s788_s18 }
  0x8b   : > { %1241 = dma.done.wait (%p1488_p12), %s321_s17, 1024  }
  0x8c   : > { %1243 = vsyncadd (%p1488_p12), %s321_s17, 4294966272  ;;  %p1791_p9 = scmp.eq.s32.totalorder %s1423_s14, 0 }
  0x8e   : > { %1245 = dma.done.wait (%p1791_p9), [#allocation9], 1024   ;;  %p1792_p5 = pmov %p1791_p9 }
  0x8f   : > { %s1793_s23 = sld [smem:[#allocation22_spill]] }
  0x90   : > { %1247 = vsyncadd (%p1792_p5), [#allocation9], 4294966272  ;;  %s1794_s4 = sld [smem:[#allocation26_spill]] }
  0x91   : > { %s1795_s24 = sld [smem:[#allocation35_spill]] }
  0x92   : > { %s1796_s16 = sld [smem:[#allocation25_spill]] }
  0x95   : > { %s363_s26 = sand.u32 1, %s1793_s23  }
  0x96   : > { %p375_p3 = scmp.lt.s32.totalorder %s1794_s4, 1  ;;  %s1627_s3 = sld [smem:[#allocation4 + %s1794_s4]] }
  0x97   : > { %s1631_s22 = sshll.u32 %s363_s26, 3 }
  0x98   : > { %s1842_s4 = smov (!%p375_p3, %s1794_s4), 1  ;;  %s365_s10 = scalar_lea.vmem [#allocation11], %s1631_s22 }
  0x99   : > { %s791_s20 = sshll.u32 %s1842_s4, 2  ;;  %p792_p12 = scmp.ne.s32.totalorder %s1796_s16, 0 }
  0x9a   : > { %s1637_s14 = scalar_lea.vmem %s1795_s24, %s791_s20 }
  0x9b   : > { %383 = sbr.rel (%p792_p12) target bundleno = 162 (0xa2), region = 56 }
  0xa0   : > { %v1312_v0 = vmov 0.0  }
  0xa1   : > { %384 = vst [vmem:[#allocation2] sm:$0xff] %v1312_v0 }
  0xa2 PF: > { %s1797_s25 = sld [smem:[#allocation25_spill]] }
  0xa8   : > { %p793_p13 = scmp.ge.s32.totalorder %s1797_s25, %s1627_s3 }
  0xaa   : > { %388 = sbr.rel (%p793_p13) target bundleno = 341 (0x155), region = 60 }
  0xaf   : > { %v872_v1 = vld [vmem:[%s1614_s15 + $0x38] sm:$0xff]  ;;  %v871_v2 = vld [vmem:[%s1614_s15 + $0x30] sm:$0xff]  ;;  %v870_v3 = vld [vmem:[%s1614_s15 + $0x28] sm:$0xff] }
  0xb0   : > { %455 = vmatpush.bf16.msra.mxu0 %v872_v1  ;;  %v869_v4 = vld [vmem:[%s1614_s15 + $0x20] sm:$0xff]  ;;  %v868_v5 = vld [vmem:[%s1614_s15 + $0x18] sm:$0xff]  ;;  %v867_v6 = vld [vmem:[%s1614_s15 + $0x10] sm:$0xff] }
  0xb1   : > { %v866_v7 = vld [vmem:[%s1614_s15 + $0x8] sm:$0xff]  ;;  %v865_v8 = vld [vmem:[%s1614_s15] sm:$0xff]  ;;  %v390_v9 = vld [vmem:[%s314_s6] sm:$0xf] }
  0xb2   : > { %v389_v10 = vld [vmem:[#allocation2] sm:$0xff] }
  0xb4   : > { %456 = vmatpush.bf16.msra.mxu0 %v871_v2 }
  0xb8   : > { %457 = vmatpush.bf16.msra.mxu0 %v870_v3 }
  0xbc   : > { %458 = vmatpush.bf16.msra.mxu0 %v869_v4 }
  0xc0   : > { %459 = vmatpush.bf16.msra.mxu0 %v868_v5 }
  0xc4   : > { %460 = vmatpush.bf16.msra.mxu0 %v867_v6 }
  0xc8   : > { %461 = vmatpush.bf16.msra.mxu0 %v866_v7 }
  0xcc   : > { %462 = vmatpush.bf16.msra.mxu0 %v865_v8 }
  0xcf   : > { %463 = vmatmul.bf16.vlgmr.msra.gmra.mxu0 %v390_v9 }
 0x14c   : > { %v464_v11 = vpop.f32.mrf.mxu0 }
 0x14d   : > { %v468_v12 = vadd.f32 %v464_v11, %v389_v10 }
 0x14f   : > { %469 = vst [vmem:[#allocation2] sm:$0xff] %v468_v12 }
 0x154   : > { %v466_v13 = vpop.f32.mrf.mxu0 }
 0x155 PF: > { %s826_s5 = sadd.s32 4294967295, %s1627_s3  ;;  %s1798_s30 = sld [smem:[#allocation25_spill]] }
 0x15b   : > { %p827_p0 = scmp.ne.s32.totalorder %s1798_s30, %s826_s5 }
 0x15c   : > { %s1799_s28 = sld [smem:[#allocation37_spill]] (!%p827_p0) }
 0x15d   : > { %474 = sbr.rel (%p827_p0) target bundleno = 581 (0x245), region = 64 }
 0x162   : > { %v880_v14 = vld [vmem:[#allocation10 + $0x38] sm:$0xff]  ;;  %v879_v15 = vld [vmem:[#allocation10 + $0x30] sm:$0xff]  ;;  %v878_v18 = vld [vmem:[#allocation10 + $0x28] sm:$0xff]  ;;  %v1313_v26 = vmov 8.0  }
 0x163   : > { %608 = vmatpush.bf16.msra.mxu0 %v880_v14  ;;  %v478_v16 = vld [vmem:[#allocation2] sm:$0xff]  ;;  %v877_v21 = vld [vmem:[#allocation10 + $0x20] sm:$0xff]  ;;  %v876_v22 = vld [vmem:[#allocation10 + $0x18] sm:$0xff] }
 0x164   : > { %v1036_v17 = vld [vmem:[%s1637_s14] ss:$0 sm:$0xff]  ;;  %v874_v27 = vld [vmem:[#allocation10 + $0x8] sm:$0xff]  ;;  %v873_v30 = vld [vmem:[#allocation10] sm:$0xff] }
 0x165   : > { %v480_v19 = vadd.f32 %v1036_v17, %v478_v16  ;;  %v875_v25 = vld [vmem:[#allocation10 + $0x10] sm:$0xff] }
 0x166   : > { %v1037_v4 = vld [vmem:[%s1637_s14 + $0x1] ss:$0 sm:$0xff]  ;;  %v1038_v7 = vld [vmem:[%s1637_s14 + $0x2] ss:$0 sm:$0xff]  ;;  %v1039_v11 = vld [vmem:[%s1799_s28] ss:$0 sm:$0xff] }
 0x167   : > { %609 = vmatpush.bf16.msra.mxu0 %v879_v15  ;;  %v828_v20 = vmul.f32 -1.442695, %v480_v19 }
 0x169   : > { %1040 = vpow2.f32 %v828_v20 }
 0x16b   : > { %610 = vmatpush.bf16.msra.mxu0 %v878_v18 }
 0x16f   : > { %611 = vmatpush.bf16.msra.mxu0 %v877_v21  ;;  %v1041_v23 = vpop.eup %1040 }
 0x170   : > { %v484_v24 = vadd.f32 1.0, %v1041_v23 }
 0x172   : > { %1042 = vrcp.f32 %v484_v24  ;;  %v496_v32 = vand.u32 2147483648, %v484_v24  ;;  %vm490_vm0 = vweird.f32 %v484_v24  ;;  %v494_v34 = vand.u32 2147483647, %v484_v24 }
 0x173   : > { %612 = vmatpush.bf16.msra.mxu0 %v876_v22  ;;  %1044 = vrcp.f32 %v1313_v26 }
 0x174   : > { %v497_v37 = vor.u32 1.1754944e-38, %v496_v32  ;;  %vm495_vm3 = vcmp.eq.f32.partialorder %v494_v34, 8.507059e+37 }
 0x177   : > { %613 = vmatpush.bf16.msra.mxu0 %v875_v25 }
 0x178   : > { %v1043_v28 = vpop.eup %1042 }
 0x179   : > { %v1045_v29 = vpop.eup %1044  ;;  %v486_v31 = vmul.f32 %v1043_v28, %v484_v24  ;;  %vm491_vm1 = vweird.f32 %v1043_v28 }
 0x17a   : > { %v507_v35 = vmul.f32 8.0, %v1045_v29  ;;  %vm492_vm2 = vmor %vm490_vm0, %vm491_vm1  ;;  %vm511_vm4 = vweird.f32 %v1045_v29 }
 0x17b   : > { %614 = vmatpush.bf16.msra.mxu0 %v874_v27  ;;  %v487_v33 = vsub.f32 1.0, %v486_v31 }
 0x17c   : > { %v508_v39 = vsub.f32 1.0, %v507_v35 }
 0x17d   : > { %v488_v36 = vmul.f32 %v1043_v28, %v487_v33 }
 0x17e   : > { %v509_v43 = vmul.f32 %v1045_v29, %v508_v39 }
 0x17f   : > { %615 = vmatpush.bf16.msra.mxu0 %v873_v30  ;;  %v489_v38 = vadd.f32 %v1043_v28, %v488_v36 }
 0x180   : > { %v510_v46 = vadd.f32 %v1045_v29, %v509_v43 }
 0x181   : > { %v493_v40 = vsel %vm492_vm2, %v1043_v28, %v489_v38 }
 0x182   : > { %v498_v41 = vsel %vm495_vm3, %v497_v37, %v493_v40  ;;  %v512_v49 = vsel %vm511_vm4, %v1045_v29, %v510_v46 }
 0x183   : > { %v500_v42 = vrot.slane %v498_v41, 4 }
 0x185   : > { %v501_v44 = vadd.f32 %v500_v42, %v498_v41 }
 0x187   : > { %v502_v45 = vrot.slane %v501_v44, 2 }
 0x189   : > { %v503_v47 = vadd.f32 %v502_v45, %v501_v44 }
 0x18b   : > { %v504_v48 = vrot.slane %v503_v47, 1 }
 0x18d   : > { %v505_v50 = vadd.f32 %v504_v48, %v503_v47 }
 0x18f   : > { %v513_v51 = vmul.f32 %v512_v49, %v505_v50 }
 0x191   : > { %v514_v52 = vsub.f32 %v498_v41, %v513_v51 }
 0x193   : > { %v515_v53 = vmul.f32 %v514_v52, %v514_v52 }
 0x195   : > { %v516_v54 = vrot.slane %v515_v53, 4 }
 0x197   : > { %v517_v55 = vadd.f32 %v516_v54, %v515_v53 }
 0x199   : > { %v518_v56 = vrot.slane %v517_v55, 2 }
 0x19b   : > { %v519_v57 = vadd.f32 %v518_v56, %v517_v55 }
 0x19d   : > { %v520_v58 = vrot.slane %v519_v57, 1 }
 0x19f   : > { %v521_v59 = vadd.f32 %v520_v58, %v519_v57 }
 0x1a1   : > { %v522_v60 = vmul.f32 %v521_v59, %v512_v49 }
 0x1a3   : > { %v523_v61 = vadd.f32 1e-05, %v522_v60 }
 0x1a5   : > { %1046 = vrsqrt.f32 %v523_v61  ;;  %vm530_vm5 = vweird.f32 %v523_v61 }
 0x1ab   : > { %v1047_v62 = vpop.eup %1046 }
 0x1ac   : > { %v525_v63 = vmul.f32 %v1047_v62, %v523_v61  ;;  %vm531_vm6 = vweird.f32 %v1047_v62 }
 0x1ad   : > { %vm532_vm7 = vmor %vm530_vm5, %vm531_vm6 }
 0x1ae   : > { %v526_v0 = vmul.f32 %v1047_v62, %v525_v63 }
 0x1b0   : > { %v527_v1 = vmul.f32 0.5, %v526_v0 }
 0x1b2   : > { %v528_v2 = vsub.f32 1.5, %v527_v1 }
 0x1b4   : > { %v529_v3 = vmul.f32 %v1047_v62, %v528_v2 }
 0x1b6   : > { %v533_v5 = vsel %vm532_vm7, %v1047_v62, %v529_v3 }
 0x1b7   : > { %v534_v6 = vmul.f32 %v533_v5, %v514_v52 }
 0x1b9   : > { %v536_v8 = vmul.f32 %v1037_v4, %v534_v6 }
 0x1bb   : > { %v538_v9 = vadd.f32 %v1038_v7, %v536_v8 }
 0x1bd   : > { %v539_v10 = vpack.c.bf16 %v538_v9, %v538_v9 }
 0x1bf   : > { %616 = vmatmul.bf16.vlgmr.msra.gmra.mxu0 %v539_v10 }
 0x23c   : > { %v617_v12 = vpop.f32.mrf.mxu0 }
 0x23d   : > { %v618_v13 = vadd.f32 %v1039_v11, %v617_v12 }
 0x23f   : > { %621 = vst [vmem:[%s365_s10] sm:$0xff] %v618_v13 }
 0x244   : > { %v619_v14 = vpop.f32.mrf.mxu0 }
 0x245 PF: > { %s1800_s0 = sld [smem:[#allocation26_spill]]  ;;  %s635_s20 = sshll.u32 %s365_s10, 4  ;;  %s636_s20 = int_to_ptr.vmem [resolvable:$true] %s635_s20 }
 0x246   : > { %s1803_s4 = sld [smem:[#allocation38_spill]]  ;;  %s623_s9 = scalar_lea.sflag [#allocation7], %s363_s26 }
 0x24b   : > { %s862_s17 = sshll.u32 %s1800_s0, 3 }
 0x24c   : > { %s633_s3 = scalar_lea.hbm %s1803_s4, %s862_s17  ;;  %s1170_s5 = scalar_lea.hbm %s1803_s4, 16 }
 0x24d   : > { %s637_s21 = sshll.u32 %s633_s3, 4  ;;  %s638_s21 = int_to_ptr.hbm [resolvable:$true] %s637_s21 }
 0x24e   : > { %s1164_s24 = sshra.s32 %s638_s21, 4  ;;  %s1165_s24 = int_to_ptr.hbm [resolvable:$true] %s1164_s24 }
 0x24f   : > { %s1166_s14 = scalar_lea.hbm %s1165_s24, 8  ;;  %p1171_p7 = scmp.lt.s32.totalorder %s1165_s24, %s1803_s4 }
 0x250   : > { %p1167_p8 = scmp.ne.s32.totalorder %s1165_s24, %s1166_s14  ;;  %p1172_p11 = scmp.lt.s32.totalorder %s1170_s5, %s1166_s14 }
 0x252   : > { %p1168_p4 = pnand %p1167_p8, %p1433_p6  ;;  %p1173_p1 = por %p1172_p11, %p1171_p7 }
 0x254   : > { %p1169_p2 = pneg %p1168_p4 }
 0x256   : > { %p1174_p10 = pnand %p1173_p1, %p1169_p2 }
 0x258   : > { %1177 = shalt.err (!%p1174_p10)
}
 0x259   : > { %893 = dma.vmem_to_hbm [thread:$0]  (%p1433_p6), %s636_s20, 128, %s638_s21, %s623_s9  }
 0x25a PF: > { %s1804_s26 = sld [smem:[#allocation21_spill]]  ;;  %p917_p9 = scmp.ge.s32.totalorder %s1306_s13, 2 }
 0x25b   : > { %s1805_s22 = sld [smem:[#allocation28_spill]] }
 0x260   : > { %s649_s10 = sand.u32 1, %s1804_s26  }
 0x261   : > { %p1806_p5 = scmp.ne.s32.totalorder %s1805_s22, 0  ;;  %s650_s6 = scalar_lea.sflag [#allocation7], %s649_s10 }
 0x263   : > { %p911_p3 = pnand %p917_p9, %p1806_p5 }
 0x265   : > { %p912_p12 = pneg %p911_p3 }
 0x267   : > { %1249 = dma.done.wait (%p912_p12), %s650_s6, 128  }
 0x268   : > { %1251 = vsyncadd (%p912_p12), %s650_s6, 4294967168  ;;  %s33_s13 = sadd.s32 1, %s1306_s13   ;;  %s1808_s25 = sld [smem:[#allocation22_spill]] }
 0x269   : > { %p1686_p13 = scmp.ge.s32.totalorder %s33_s13, 6   ;;  %s1809_s26 = sld [smem:[#allocation23_spill]] }
 0x26a   : > { %s1810_s27 = sld [smem:[#allocation33_spill]]  ;;  %s1820_s30 = smov %s1282_s7 }
 0x26b   : > { %s1811_s0 = sld [smem:[#allocation24_spill]]  ;;  %s1821_s7 = smov %s1286_s8 }
 0x26c   : > { %s1812_s18 = sld [smem:[#allocation34_spill]]  ;;  %s1823_s9 = smov %s1298_s11 }
 0x26d   : > { %s1813_s17 = sld [smem:[#allocation32_spill]]  ;;  %s1824_s10 = smov %s1302_s12 }
 0x26e   : > { %s1814_s15 = sld [smem:[#allocation29_spill]] }
 0x26f   : > { %s1815_s23 = sld [smem:[#allocation30_spill]] }
 0x271   : > { %s1817_s28 = smov %s1811_s0  ;;  %s1818_s0 = smov %s1274_s29 }
 0x272   : > { %s1819_s29 = smov %s1812_s18  ;;  %32 = sbr.rel (!%p1686_p13) target bundleno = 21 (0x15), region = 117 }
 0x273   : > { %s1822_s8 = smov %s1813_s17 }
 0x274   : > { %s1825_s11 = smov %s1814_s15 }
 0x275   : > { %s1826_s12 = smov %s1815_s23 }
 0x277   :  { %656 = vsyncpa [#allocation6], 1 }
 0x278   :  { %658 = vsyncpa [#allocation6 + $0x1], 1 }
 0x279   :  { %659 = vsyncpa [#allocation9], 1 }
 0x27a   :  { %661 = vsyncpa [#allocation9 + $0x1], 1 }
 0x27b   :  { %662 = vsyncpa [#allocation7], 1 }
 0x27c   :  { %664 = vsyncpa [#allocation7 + $0x1], 1 }

</bundles_post_ra>
